<compile_context>
chip_gen: v7x
topology: tpu7x:2x2x1
jax: 0.10.0
libtpu: 0.0.40
codegen_flags: <defaults>
</compile_context>

<pallas_src>
import functools

import numpy as np
import jax
import jax.numpy as jnp
from jax.experimental import pallas as pl
from jax.experimental.pallas import tpu as pltpu


def dueling_dqn_kernel(
    state_ref,                      # (TB, D_in)  compute dtype (bf16)
    w1_ref, b1_ref,                 # (D_in, L), (1, L)
    w2_ref, b2_ref,                 # (L, L),   (1, L)
    wh1_ref, bh1_ref,               # fused heads layer 1: (L, 2L), (1, 2L)
    wh2_ref, bh2_ref,               # fused heads layer 2 (block-diag): (2L, 1+A), (1, 1+A)
    out_ref,                        # (B_pad, A) f32, resident across the whole grid
    asum_ref,                       # VMEM (1, 1) f32 scratch: running sum of advantages
    *, batch, block_b,
):
    i = pl.program_id(0)
    cdt = state_ref.dtype
    A = out_ref.shape[1]

    @pl.when(i == 0)
    def _():
        asum_ref[...] = jnp.zeros_like(asum_ref)

    # ---- feature MLP: Linear+ReLU, Linear+ReLU ----
    x = state_ref[...]
    h = jnp.dot(x, w1_ref[...], preferred_element_type=jnp.float32) + b1_ref[...]
    h = jnp.maximum(h, 0.0).astype(cdt)
    h = jnp.dot(h, w2_ref[...], preferred_element_type=jnp.float32) + b2_ref[...]
    h = jnp.maximum(h, 0.0).astype(cdt)                          # (TB, L)

    # ---- fused value/advantage heads ----
    hh = jnp.dot(h, wh1_ref[...], preferred_element_type=jnp.float32) + bh1_ref[...]
    hh = jnp.maximum(hh, 0.0).astype(cdt)                        # (TB, 2L) = [v_h | a_h]
    va = jnp.dot(hh, wh2_ref[...], preferred_element_type=jnp.float32) + bh2_ref[...]
    v = va[:, 0:1]                                               # (TB, 1)
    a = va[:, 1:]                                                # (TB, A)

    # ---- global advantage-sum accumulation (mask rows beyond the true batch) ----
    row = i * block_b + jax.lax.broadcasted_iota(jnp.int32, (block_b, 1), 0)
    valid = row < batch
    asum_ref[...] += jnp.sum(jnp.where(valid, a, 0.0), keepdims=True)

    start = pl.multiple_of(i * block_b, block_b)
    out_ref[pl.ds(start, block_b), :] = v + a

    # ---- finalize: subtract the global advantage mean from every row ----
    @pl.when(i == pl.num_programs(0) - 1)
    def _():
        mean = asum_ref[...] * (1.0 / (batch * A))               # (1, 1)
        out_ref[...] = out_ref[...] - mean


def prepare_params(params, compute_dtype=jnp.bfloat16):
    """Fuse the two head streams and cast matmul weights to the compute dtype.

    Layer-1 of both heads consumes the same features h, so vw1|aw1 concatenate
    into a single (L, 2L) weight.  Layer-2 consumes the two disjoint halves of
    that output, so vw2/aw2 are laid out block-diagonally in a (2L, 1+A)
    weight:   [[vw2, 0], [0, aw2]]   giving  [v | a] = [v_h | a_h] @ W2 + b2
    in one MXU pass (instead of an N=1 matmul plus an N=A matmul).
    """
    (w1, b1, w2, b2, vw1, vb1, vw2, vb2, aw1, ab1, aw2, ab2) = params
    L = w2.shape[1]
    A = aw2.shape[1]

    wh1 = jnp.concatenate([vw1, aw1], axis=1)                    # (L, 2L)
    bh1 = jnp.concatenate([vb1, ab1], axis=1)                    # (1, 2L)

    wh2 = jnp.zeros((2 * L, 1 + A), jnp.float32)
    wh2 = wh2.at[:L, 0:1].set(vw2)
    wh2 = wh2.at[L:, 1:].set(aw2)                                # (2L, 1+A)
    bh2 = jnp.concatenate([vb2, ab2], axis=1)                    # (1, 1+A)

    cast = lambda w: w.astype(compute_dtype)
    f32 = lambda b: b.astype(jnp.float32)
    return (cast(w1), f32(b1), cast(w2), f32(b2),
            cast(wh1), f32(bh1), cast(wh2), f32(bh2))


def dueling_dqn_forward(state, params, *, block_b=128, compute_dtype=jnp.bfloat16):
    B, D_in = state.shape
    prepped = prepare_params(params, compute_dtype)
    w1, b1, w2, b2, wh1, bh1, wh2, bh2 = prepped
    L = w2.shape[1]
    A = wh2.shape[1] - 1

    # Batch tile: >=128 rows fills the MXU for real replay batches; for tiny
    # batches just round up to the 8-row sublane granularity.
    TB = block_b if B >= block_b else -(-B // 8) * 8
    B_pad = -(-B // TB) * TB
    if B_pad != B:
        state = jnp.pad(state, ((0, B_pad - B), (0, 0)))
    state = state.astype(compute_dtype)
    grid = (B_pad // TB,)

    flops = 2 * B * (D_in * L + L * L + L * (2 * L) + (2 * L) * (1 + A))
    bytes_accessed = int(
        state.size * state.dtype.itemsize
        + sum(int(p.size) * p.dtype.itemsize for p in prepped)
        + B_pad * A * 4
    )

    kernel = functools.partial(dueling_dqn_kernel, batch=B, block_b=TB)

    out = pl.pallas_call(
        kernel,
        out_shape=jax.ShapeDtypeStruct((B_pad, A), jnp.float32),
        grid_spec=pltpu.PrefetchScalarGridSpec(
            num_scalar_prefetch=0,
            grid=grid,
            in_specs=[
                pl.BlockSpec((TB, D_in), lambda i: (i, 0)),      # state: streamed tiles
                pl.BlockSpec(w1.shape, lambda i: (0, 0)),        # weights: VMEM-resident
                pl.BlockSpec(b1.shape, lambda i: (0, 0)),
                pl.BlockSpec(w2.shape, lambda i: (0, 0)),
                pl.BlockSpec(b2.shape, lambda i: (0, 0)),
                pl.BlockSpec(wh1.shape, lambda i: (0, 0)),
                pl.BlockSpec(bh1.shape, lambda i: (0, 0)),
                pl.BlockSpec(wh2.shape, lambda i: (0, 0)),
                pl.BlockSpec(bh2.shape, lambda i: (0, 0)),
            ],
            # Full output stays VMEM-resident so the finalize step can apply the
            # global advantage mean exactly as PyTorch does.
            # TODO(synk): for very large B this caps at VMEM; the standard
            # per-row advantage mean would allow a tiled/"parallel" output.
            out_specs=pl.BlockSpec((B_pad, A), lambda i: (0, 0)),
            scratch_shapes=[pltpu.VMEM((1, 1), jnp.float32)],
        ),
        compiler_params=pltpu.CompilerParams(
            dimension_semantics=("arbitrary",),   # global mean couples batch tiles
        ),
        cost_estimate=pl.CostEstimate(
            flops=flops, transcendentals=0, bytes_accessed=bytes_accessed),
    )(state, w1, b1, w2, b2, wh1, bh1, wh2, bh2)

    return out[:B]


def init_params(key, input_dim, output_dim, layer_dim):
    """Deterministic synthetic parameters (shapes match the PyTorch module)."""
    ks = jax.random.split(key, 12)
    scale = 0.1

    def lin(kw, kb, fan_in, fan_out):
        w = scale * jax.random.normal(kw, (fan_in, fan_out), jnp.float32)
        b = scale * jax.random.normal(kb, (1, fan_out), jnp.float32)
        return w, b

    w1, b1 = lin(ks[0], ks[1], input_dim, layer_dim)
    w2, b2 = lin(ks[2], ks[3], layer_dim, layer_dim)
    vw1, vb1 = lin(ks[4], ks[5], layer_dim, layer_dim)
    vw2, vb2 = lin(ks[6], ks[7], layer_dim, 1)
    aw1, ab1 = lin(ks[8], ks[9], layer_dim, layer_dim)
    aw2, ab2 = lin(ks[10], ks[11], layer_dim, output_dim)
    return (w1, b1, w2, b2, vw1, vb1, vw2, vb2, aw1, ab1, aw2, ab2)


def reference_forward(state, params):
    """Pure-JAX f32 reference mirroring the PyTorch forward exactly."""
    (w1, b1, w2, b2, vw1, vb1, vw2, vb2, aw1, ab1, aw2, ab2) = params
    h = jnp.maximum(state @ w1 + b1, 0.0)
    h = jnp.maximum(h @ w2 + b2, 0.0)
    v = jnp.maximum(h @ vw1 + vb1, 0.0) @ vw2 + vb2
    a = jnp.maximum(h @ aw1 + ab1, 0.0) @ aw2 + ab2
    return v + (a - jnp.mean(a))


if __name__ == "__main__":
    # Shapes consistent with the module: input_dim=(16,), output_dim=8, layer_dim=32
    B, D_IN, N_ACTIONS, LAYER_DIM = 2, 16, 8, 32

    key = jax.random.PRNGKey(0)
    k_state, k_params, k_big = jax.random.split(key, 3)

    params = init_params(k_params, D_IN, N_ACTIONS, LAYER_DIM)

    # Small demo batch (bf16 compute, f32 accumulation -> loose tolerance vs f32 ref).
    state = jax.random.normal(k_state, (B, D_IN), jnp.float32)
    qvals = jax.block_until_ready(dueling_dqn_forward(state, params))
    ref = reference_forward(state, params)
    np.testing.assert_allclose(np.asarray(qvals), np.asarray(ref), rtol=5e-2, atol=1e-2)

    # Larger batch exercising the multi-tile grid path + padded-row masking.
    B_big = 300
    state_big = jax.random.normal(k_big, (B_big, D_IN), jnp.float32)
    qvals_big = jax.block_until_ready(dueling_dqn_forward(state_big, params))
    ref_big = reference_forward(state_big, params)
    np.testing.assert_allclose(np.asarray(qvals_big), np.asarray(ref_big),
                               rtol=5e-2, atol=1e-2)

    print("KERNEL_OK")
</pallas_src>

<mosaic_0001>
module attributes {stable_mosaic.version = 11 : i64} {
  func.func @dueling_dqn_kernel(%arg0: i32, %arg1: memref<8x16xbf16, #tpu.memory_space<vmem>>, %arg2: memref<16x32xbf16, #tpu.memory_space<vmem>>, %arg3: memref<1x32xf32, #tpu.memory_space<vmem>>, %arg4: memref<32x32xbf16, #tpu.memory_space<vmem>>, %arg5: memref<1x32xf32, #tpu.memory_space<vmem>>, %arg6: memref<32x64xbf16, #tpu.memory_space<vmem>>, %arg7: memref<1x64xf32, #tpu.memory_space<vmem>>, %arg8: memref<64x9xbf16, #tpu.memory_space<vmem>>, %arg9: memref<1x9xf32, #tpu.memory_space<vmem>>, %arg10: memref<8x8xf32, #tpu.memory_space<vmem>>, %arg11: memref<1x1xf32, #tpu.memory_space<vmem>>) attributes {dimension_semantics = [#tpu.dimension_semantics<arbitrary>], iteration_bounds = array<i64: 1>, scalar_prefetch = 0 : i64, scratch_operands = 1 : i64, tpu.core_type = #tpu.core_type<tc>, window_params = [{transform_indices = @transform_0, window_bounds = array<i64: 8, 16>}, {pipeline_mode = #tpu.pipeline_mode<synchronous>, transform_indices = @transform_1, window_bounds = array<i64: 16, 32>}, {pipeline_mode = #tpu.pipeline_mode<synchronous>, transform_indices = @transform_2, window_bounds = array<i64: 1, 32>}, {pipeline_mode = #tpu.pipeline_mode<synchronous>, transform_indices = @transform_3, window_bounds = array<i64: 32, 32>}, {pipeline_mode = #tpu.pipeline_mode<synchronous>, transform_indices = @transform_4, window_bounds = array<i64: 1, 32>}, {pipeline_mode = #tpu.pipeline_mode<synchronous>, transform_indices = @transform_5, window_bounds = array<i64: 32, 64>}, {pipeline_mode = #tpu.pipeline_mode<synchronous>, transform_indices = @transform_6, window_bounds = array<i64: 1, 64>}, {pipeline_mode = #tpu.pipeline_mode<synchronous>, transform_indices = @transform_7, window_bounds = array<i64: 64, 9>}, {pipeline_mode = #tpu.pipeline_mode<synchronous>, transform_indices = @transform_8, window_bounds = array<i64: 1, 9>}, {pipeline_mode = #tpu.pipeline_mode<synchronous>, transform_indices = @transform_9, window_bounds = array<i64: 8, 8>}]} {
    %c0_i32 = arith.constant 0 : i32
    %0 = arith.cmpi eq, %arg0, %c0_i32 : i32
    %1 = arith.extui %0 : i1 to i32
    %c0_i32_0 = arith.constant 0 : i32
    %2 = arith.cmpi ne, %1, %c0_i32_0 : i32
    scf.if %2 {
      %cst_34 = arith.constant 0.000000e+00 : f32
      %62 = vector.broadcast %cst_34 : f32 to vector<1x1xf32>
      %c0_35 = arith.constant 0 : index
      %c0_36 = arith.constant 0 : index
      %63 = vector.load %arg11[%c0_35, %c0_36] : memref<1x1xf32, #tpu.memory_space<vmem>>, vector<1x1xf32>
      tpu.vector_store %arg11[%c0_35, %c0_36], %62 {strides = array<i32>} : memref<1x1xf32, #tpu.memory_space<vmem>>, vector<1x1xf32>,
    } else {
    }
    %c0 = arith.constant 0 : index
    %c0_1 = arith.constant 0 : index
    %3 = vector.load %arg1[%c0, %c0_1] : memref<8x16xbf16, #tpu.memory_space<vmem>>, vector<8x16xbf16>
    %c0_2 = arith.constant 0 : index
    %c0_3 = arith.constant 0 : index
    %4 = vector.load %arg2[%c0_2, %c0_3] : memref<16x32xbf16, #tpu.memory_space<vmem>>, vector<16x32xbf16>
    %cst = arith.constant dense<0.000000e+00> : vector<8x32xf32>
    %5 = tpu.matmul %3, %4, %cst {dimension_numbers = #tpu.dot_dimension_numbers<[1], [0], [0], [1], [0, 0, 1, 1], [], []>} : vector<8x16xbf16>, vector<16x32xbf16>, vector<8x32xf32> -> vector<8x32xf32>
    %c0_4 = arith.constant 0 : index
    %c0_5 = arith.constant 0 : index
    %6 = vector.load %arg3[%c0_4, %c0_5] : memref<1x32xf32, #tpu.memory_space<vmem>>, vector<1x32xf32>
    %7 = vector.broadcast %6 : vector<1x32xf32> to vector<8x32xf32>
    %8 = arith.addf %5, %7 : vector<8x32xf32>
    %cst_6 = arith.constant 0.000000e+00 : f32
    %9 = vector.broadcast %cst_6 : f32 to vector<8x32xf32>
    %10 = arith.maximumf %8, %9 : vector<8x32xf32>
    %11 = arith.truncf %10 : vector<8x32xf32> to vector<8x32xbf16>
    %c0_7 = arith.constant 0 : index
    %c0_8 = arith.constant 0 : index
    %12 = vector.load %arg4[%c0_7, %c0_8] : memref<32x32xbf16, #tpu.memory_space<vmem>>, vector<32x32xbf16>
    %cst_9 = arith.constant dense<0.000000e+00> : vector<8x32xf32>
    %13 = tpu.matmul %11, %12, %cst_9 {dimension_numbers = #tpu.dot_dimension_numbers<[1], [0], [0], [1], [0, 0, 1, 1], [], []>} : vector<8x32xbf16>, vector<32x32xbf16>, vector<8x32xf32> -> vector<8x32xf32>
    %c0_10 = arith.constant 0 : index
    %c0_11 = arith.constant 0 : index
    %14 = vector.load %arg5[%c0_10, %c0_11] : memref<1x32xf32, #tpu.memory_space<vmem>>, vector<1x32xf32>
    %15 = vector.broadcast %14 : vector<1x32xf32> to vector<8x32xf32>
    %16 = arith.addf %13, %15 : vector<8x32xf32>
    %cst_12 = arith.constant 0.000000e+00 : f32
    %17 = vector.broadcast %cst_12 : f32 to vector<8x32xf32>
    %18 = arith.maximumf %16, %17 : vector<8x32xf32>
    %19 = arith.truncf %18 : vector<8x32xf32> to vector<8x32xbf16>
    %c0_13 = arith.constant 0 : index
    %c0_14 = arith.constant 0 : index
    %20 = vector.load %arg6[%c0_13, %c0_14] : memref<32x64xbf16, #tpu.memory_space<vmem>>, vector<32x64xbf16>
    %cst_15 = arith.constant dense<0.000000e+00> : vector<8x64xf32>
    %21 = tpu.matmul %19, %20, %cst_15 {dimension_numbers = #tpu.dot_dimension_numbers<[1], [0], [0], [1], [0, 0, 1, 1], [], []>} : vector<8x32xbf16>, vector<32x64xbf16>, vector<8x64xf32> -> vector<8x64xf32>
    %c0_16 = arith.constant 0 : index
    %c0_17 = arith.constant 0 : index
    %22 = vector.load %arg7[%c0_16, %c0_17] : memref<1x64xf32, #tpu.memory_space<vmem>>, vector<1x64xf32>
    %23 = vector.broadcast %22 : vector<1x64xf32> to vector<8x64xf32>
    %24 = arith.addf %21, %23 : vector<8x64xf32>
    %cst_18 = arith.constant 0.000000e+00 : f32
    %25 = vector.broadcast %cst_18 : f32 to vector<8x64xf32>
    %26 = arith.maximumf %24, %25 : vector<8x64xf32>
    %27 = arith.truncf %26 : vector<8x64xf32> to vector<8x64xbf16>
    %c0_19 = arith.constant 0 : index
    %c0_20 = arith.constant 0 : index
    %28 = vector.load %arg8[%c0_19, %c0_20] : memref<64x9xbf16, #tpu.memory_space<vmem>>, vector<64x9xbf16>
    %cst_21 = arith.constant dense<0.000000e+00> : vector<8x9xf32>
    %29 = tpu.matmul %27, %28, %cst_21 {dimension_numbers = #tpu.dot_dimension_numbers<[1], [0], [0], [1], [0, 0, 1, 1], [], []>} : vector<8x64xbf16>, vector<64x9xbf16>, vector<8x9xf32> -> vector<8x9xf32>
    %c0_22 = arith.constant 0 : index
    %c0_23 = arith.constant 0 : index
    %30 = vector.load %arg9[%c0_22, %c0_23] : memref<1x9xf32, #tpu.memory_space<vmem>>, vector<1x9xf32>
    %31 = vector.broadcast %30 : vector<1x9xf32> to vector<8x9xf32>
    %32 = arith.addf %29, %31 : vector<8x9xf32>
    %33 = vector.extract_strided_slice %32 {offsets = [0, 0], sizes = [8, 1], strides = [1, 1]} : vector<8x9xf32> to vector<8x1xf32>
    %34 = vector.extract_strided_slice %32 {offsets = [0, 1], sizes = [8, 8], strides = [1, 1]} : vector<8x9xf32> to vector<8x8xf32>
    %c8_i32 = arith.constant 8 : i32
    %35 = arith.muli %arg0, %c8_i32 : i32
    %36 = tpu.iota {dimensions = array<i32: 0>} : vector<8x1xi32>
    %37 = vector.broadcast %35 : i32 to vector<8x1xi32>
    %38 = arith.addi %37, %36 : vector<8x1xi32>
    %c2_i32 = arith.constant 2 : i32
    %39 = vector.broadcast %c2_i32 : i32 to vector<8x1xi32>
    %40 = arith.cmpi slt, %38, %39 : vector<8x1xi32>
    %c0_24 = arith.constant 0 : index
    %c0_25 = arith.constant 0 : index
    %41 = vector.load %arg11[%c0_24, %c0_25] : memref<1x1xf32, #tpu.memory_space<vmem>>, vector<1x1xf32>
    %cst_26 = arith.constant 0.000000e+00 : f32
    %42 = vector.shape_cast %40 : vector<8x1xi1> to vector<8x1xi1>
    %43 = vector.broadcast %42 : vector<8x1xi1> to vector<8x8xi1>
    %44 = vector.broadcast %cst_26 : f32 to vector<8x8xf32>
    %45 = arith.select %43, %34, %44 : vector<8x8xi1>, vector<8x8xf32>
    %46 = vector.shape_cast %45 : vector<8x8xf32> to vector<1x8x8xf32>
    %cst_27 = arith.constant dense<0.000000e+00> : vector<1xf32>
    %47 = vector.multi_reduction <add>, %46, %cst_27 [1, 2] : vector<1x8x8xf32> to vector<1xf32>
    %48 = vector.shape_cast %47 : vector<1xf32> to vector<1x1x1xf32>
    %49 = vector.extract %48[0, 0, 0] : f32 from vector<1x1x1xf32>
    %50 = vector.broadcast %49 : f32 to vector<1x1xf32>
    %51 = arith.addf %41, %50 : vector<1x1xf32>
    %c0_28 = arith.constant 0 : index
    %c0_29 = arith.constant 0 : index
    %52 = vector.load %arg11[%c0_28, %c0_29] : memref<1x1xf32, #tpu.memory_space<vmem>>, vector<1x1xf32>
    tpu.vector_store %arg11[%c0_28, %c0_29], %51 {strides = array<i32>} : memref<1x1xf32, #tpu.memory_space<vmem>>, vector<1x1xf32>,
    %c8_i32_30 = arith.constant 8 : i32
    %53 = arith.muli %arg0, %c8_i32_30 : i32
    %54 = tpu.assume_multiple %53, 8 : i32
    %55 = vector.broadcast %33 : vector<8x1xf32> to vector<8x8xf32>
    %56 = arith.addf %55, %34 : vector<8x8xf32>
    %57 = arith.index_cast %54 : i32 to index
    %c0_31 = arith.constant 0 : index
    %58 = vector.load %arg10[%57, %c0_31] : memref<8x8xf32, #tpu.memory_space<vmem>>, vector<8x8xf32>
    tpu.vector_store %arg10[%57, %c0_31], %56 {strides = array<i32>} : memref<8x8xf32, #tpu.memory_space<vmem>>, vector<8x8xf32>,
    %c0_i32_32 = arith.constant 0 : i32
    %59 = arith.cmpi eq, %arg0, %c0_i32_32 : i32
    %60 = arith.extui %59 : i1 to i32
    %c0_i32_33 = arith.constant 0 : i32
    %61 = arith.cmpi ne, %60, %c0_i32_33 : i32
    scf.if %61 {
      %c0_34 = arith.constant 0 : index
      %c0_35 = arith.constant 0 : index
      %62 = vector.load %arg11[%c0_34, %c0_35] : memref<1x1xf32, #tpu.memory_space<vmem>>, vector<1x1xf32>
      %cst_36 = arith.constant 6.250000e-02 : f32
      %63 = vector.broadcast %cst_36 : f32 to vector<1x1xf32>
      %64 = arith.mulf %62, %63 : vector<1x1xf32>
      %c0_37 = arith.constant 0 : index
      %c0_38 = arith.constant 0 : index
      %65 = vector.load %arg10[%c0_37, %c0_38] : memref<8x8xf32, #tpu.memory_space<vmem>>, vector<8x8xf32>
      %66 = vector.broadcast %64 : vector<1x1xf32> to vector<8x8xf32>
      %67 = arith.subf %65, %66 : vector<8x8xf32>
      %c0_39 = arith.constant 0 : index
      %c0_40 = arith.constant 0 : index
      %68 = vector.load %arg10[%c0_39, %c0_40] : memref<8x8xf32, #tpu.memory_space<vmem>>, vector<8x8xf32>
      tpu.vector_store %arg10[%c0_39, %c0_40], %67 {strides = array<i32>} : memref<8x8xf32, #tpu.memory_space<vmem>>, vector<8x8xf32>,
    } else {
    }
    return
  }
  func.func @transform_0(%arg0: i32) -> (i32, i32) {
    %c0_i32 = arith.constant 0 : i32
    %c0_i32_0 = arith.constant 0 : i32
    return %arg0, %c0_i32 : i32, i32
  }
  func.func @transform_1(%arg0: i32) -> (i32, i32) {
    %c0_i32 = arith.constant 0 : i32
    %c0_i32_0 = arith.constant 0 : i32
    %c0_i32_1 = arith.constant 0 : i32
    return %c0_i32, %c0_i32_0 : i32, i32
  }
  func.func @transform_2(%arg0: i32) -> (i32, i32) {
    %c0_i32 = arith.constant 0 : i32
    %c0_i32_0 = arith.constant 0 : i32
    %c0_i32_1 = arith.constant 0 : i32
    return %c0_i32, %c0_i32_0 : i32, i32
  }
  func.func @transform_3(%arg0: i32) -> (i32, i32) {
    %c0_i32 = arith.constant 0 : i32
    %c0_i32_0 = arith.constant 0 : i32
    %c0_i32_1 = arith.constant 0 : i32
    return %c0_i32, %c0_i32_0 : i32, i32
  }
  func.func @transform_4(%arg0: i32) -> (i32, i32) {
    %c0_i32 = arith.constant 0 : i32
    %c0_i32_0 = arith.constant 0 : i32
    %c0_i32_1 = arith.constant 0 : i32
    return %c0_i32, %c0_i32_0 : i32, i32
  }
  func.func @transform_5(%arg0: i32) -> (i32, i32) {
    %c0_i32 = arith.constant 0 : i32
    %c0_i32_0 = arith.constant 0 : i32
    %c0_i32_1 = arith.constant 0 : i32
    return %c0_i32, %c0_i32_0 : i32, i32
  }
  func.func @transform_6(%arg0: i32) -> (i32, i32) {
    %c0_i32 = arith.constant 0 : i32
    %c0_i32_0 = arith.constant 0 : i32
    %c0_i32_1 = arith.constant 0 : i32
    return %c0_i32, %c0_i32_0 : i32, i32
  }
  func.func @transform_7(%arg0: i32) -> (i32, i32) {
    %c0_i32 = arith.constant 0 : i32
    %c0_i32_0 = arith.constant 0 : i32
    %c0_i32_1 = arith.constant 0 : i32
    return %c0_i32, %c0_i32_0 : i32, i32
  }
  func.func @transform_8(%arg0: i32) -> (i32, i32) {
    %c0_i32 = arith.constant 0 : i32
    %c0_i32_0 = arith.constant 0 : i32
    %c0_i32_1 = arith.constant 0 : i32
    return %c0_i32, %c0_i32_0 : i32, i32
  }
  func.func @transform_9(%arg0: i32) -> (i32, i32) {
    %c0_i32 = arith.constant 0 : i32
    %c0_i32_0 = arith.constant 0 : i32
    %c0_i32_1 = arith.constant 0 : i32
    return %c0_i32, %c0_i32_0 : i32, i32
  }
}

</mosaic_0001>

<bundles_post_ra>
// kernel: tpu_custom_call.1
= control target key start
LH: loop header
LB: loop body
LE: loop exit
PB: predicated region body
PF: predicated region fallthrough
CT: control target
= control target key end

     0   :  { %14 = vsyncpa [#allocation4], 0  ;;  %s682_s0 = inlined_call_operand.hbm [shape: bf16[8,16], index: 0, kind: input, shape index: {}]   ;;  %s683_s1 = inlined_call_operand.vmem [shape: bf16[16,32], index: 1, kind: input, shape index: {}]   ;;  %s684_s2 = inlined_call_operand.vmem [shape: f32[1,32], index: 2, kind: input, shape index: {}]   ;;  %s685_s3 = inlined_call_operand.vmem [shape: bf16[32,32], index: 3, kind: input, shape index: {}]   ;;  %s686_s4 = inlined_call_operand.vmem [shape: f32[1,32], index: 4, kind: input, shape index: {}]   ;;  %s687_s5 = inlined_call_operand.vmem [shape: bf16[32,64], index: 5, kind: input, shape index: {}]   ;;  %s688_s6 = inlined_call_operand.vmem [shape: f32[1,64], index: 6, kind: input, shape index: {}]   ;;  %s689_s7 = inlined_call_operand.vmem [shape: bf16[64,9], index: 7, kind: input, shape index: {}]   ;;  %s690_s8 = inlined_call_operand.vmem [shape: f32[1,9], index: 8, kind: input, shape index: {}]   ;;  %s691_s9 = inlined_call_operand.hbm [shape: f32[8,8], index: 9, kind: output, shape index: {}]  }
   0x1   :  { %15 = vsyncpa [#allocation5], 0  ;;  %s538_s30 = smov [#allocation3]   ;;  %s490_s13 = scalar_lea.hbm %s682_s0, 64 }
   0x2   :  { %s22_s10 = sshll.u32 %s538_s30, 4  ;;  %p491_p0 = scmp.ne.s32.totalorder %s682_s0, %s490_s13  ;;  %s23_s10 = int_to_ptr.vmem [resolvable:$true] %s22_s10 }
   0x3   :  { %p494_p1 = scmp.lt.u32.totalorder %s490_s13, %s682_s0 }
   0x5   :  { %p496_p2 = pnand %p494_p1, %p491_p0 }
   0x7   :  { %499 = shalt.err (!%p496_p2)
}
   0x8   :  { %s500_s18 = scalar_lea.vmem %s23_s10, 64  ;;  %p505_p4 = scmp.lt.s32.totalorder %s23_s10, %s23_s10 }
   0x9   :  { %p501_p3 = scmp.ne.s32.totalorder %s23_s10, %s500_s18  ;;  %p506_p5 = scmp.lt.s32.totalorder %s500_s18, %s500_s18 }
   0xb   :  { %p507_p6 = por %p506_p5, %p505_p4 }
   0xd   :  { %p508_p7 = pnand %p507_p6, %p501_p3 }
   0xf   :  { %511 = shalt.err (!%p508_p7)
}
  0x10   :  { %25 = dma.hbm_to_vmem [thread:$0]  %s682_s0, 64, %s23_s10, [#allocation4]  }
  0x11   :  { %534 = dma.done.wait [#allocation4], 64  }
  0x12   :  { %535 = vsyncadd [#allocation4], 4294967232  ;;  %v539_v0 = vmov 0.0   ;;  %vm540_vm0 = vmmov 0   ;;  %v481_v1 = vld [vmem:[%s683_s1] sm:$0xff]   ;;  %vm68_vm1 = vcmask 130048   ;;  %v335_v36 = vlaneseq }
  0x13   :  { %437 = vmatprep.subr.bf16.mxu0 %v539_v0  ;;  %439 = vmatprep.mubr.msk.bf16.mxu0 %vm540_vm0, %v539_v0  ;;  %v52_v2 = vld [vmem:[#allocation3] sm:$0xf]  ;;  %v483_v4 = vld [vmem:[%s685_s3 + $0x8] sm:$0xff]   ;;  %v407_v5 = vld [vmem:[%s684_s2] ss:$0 sm:$0xff]  ;;  %vm137_vm2 = vcmask 261120  }
  0x14   :  { %459 = vmatprep.subr.bf16.mxu1 %v539_v0  ;;  %467 = vmatprep.mubr.msk.bf16.mxu1 %vm540_vm0, %v539_v0  ;;  %v482_v3 = vld [vmem:[%s685_s3] sm:$0xff]   ;;  %v485_v14 = vld [vmem:[%s687_s5 + $0x8] sm:$0xff]   ;;  %v488_v25 = vld [vmem:[%s689_s7 + $0x10] sm:$0xff]   ;;  %vm290_vm3 = vcmask 523264   ;;  %v541_v35 = vmov 0   ;;  %v336_v37 = vshrl.u32 %v335_v36, 7 }
  0x15   :  { %438 = vmatpush3.bf16.msra.mxu0 %v481_v1  ;;  %v484_v12 = vld [vmem:[%s687_s5] sm:$0xff]   ;;  %v487_v16 = vld [vmem:[%s689_s7 + $0x8] sm:$0xff]   ;;  %v489_v26 = vld [vmem:[%s689_s7 + $0x18] sm:$0xff]   ;;  %479 = vset.pattern.permute.xlu1 %v541_v35  ;;  %vm348_vm5 = vcmask 64512   ;;  %vm50_vm6 = vcmask 0   ;;  %s543_s19 = smov [#allocation6]  }
  0x16   :  { %443 = vmatprep.subr.bf16.mxu0 %v539_v0  ;;  %v486_v15 = vld [vmem:[%s689_s7] sm:$0xff]   ;;  %480 = vset.pattern.permute.xlu0 %v541_v35  ;;  %vm339_vm4 = vcmp.lt.s32.totalorder %v336_v37, 2  ;;  %51 = vst.msk [vmem:[#allocation2] sm:$0x1] %vm50_vm6, %v539_v0  ;;  %v384_v60 = vsub.s32 0, %v336_v37  ;;  %s398_s20 = sshll.u32 %s543_s19, 4  ;;  %s399_s20 = int_to_ptr.vmem [resolvable:$true] %s398_s20 }
  0x17   :  { %460 = vmatpush3.bf16.msra.mxu1 %v486_v15  ;;  %v410_v17 = vld [vmem:[%s686_s4] ss:$0 sm:$0xff]  ;;  %s512_s21 = scalar_lea.vmem %s399_s20, 128  ;;  %p517_p9 = scmp.lt.s32.totalorder %s399_s20, %s399_s20 }
  0x18   :  { %440 = vmatmul.mubr.msk.bf16.vlgmr.msra.gmra.mrb[0].mxu0 %vm68_vm1, %v52_v2  ;;  %461 = vmatprep.subr.bf16.mxu1 %v539_v0  ;;  %v414_v27 = vld [vmem:[%s688_s6] ss:$0 sm:$0xff]  ;;  %s542_s6 = smov 127   ;;  %p513_p8 = scmp.ne.s32.totalorder %s399_s20, %s512_s21 }
  0x19   :  { %444 = vmatpush3.bf16.msra.mxu0 %v482_v3  ;;  %447 = vmatprep.mubr.msk.bf16.mxu0 %vm540_vm0, %v539_v0  ;;  %v418_v38 = vld [vmem:[%s690_s8] ss:$0 sm:$0xff]  ;;  %p518_p10 = scmp.lt.s32.totalorder %s512_s21, %s512_s21 }
  0x1a   :  { %445 = vmatprep.subr.bf16.mxu0 %v539_v0 }
  0x1b   :  { %462 = vmatpush3.bf16.msra.mxu1 %v487_v16  ;;  %p519_p11 = por %p518_p10, %p517_p9 }
  0x1c   :  { %463 = vmatprep.subr.bf16.mxu1 %v539_v0 }
  0x1d   :  { %446 = vmatpush3.bf16.msra.mxu0 %v483_v4  ;;  %v340_v57 = vld [vmem:[#allocation2] sm:$0x1]  ;;  %p520_p12 = pnand %p519_p11, %p513_p8 }
  0x1e   :  { %451 = vmatprep.subr.bf16.mxu0 %v539_v0 }
  0x1f   :  { %464 = vmatpush3.bf16.msra.mxu1 %v488_v25 }
  0x20   :  { %465 = vmatprep.subr.bf16.mxu1 %v539_v0 }
  0x23   :  { %466 = vmatpush3.bf16.msra.mxu1 %v489_v26 }
  0xeb   :  { %v106_v6 = vpop.f32.mrb[0].mxu0 }
  0xec   :  { %v107_v7 = vadd.f32 %v407_v5, %v106_v6  ;;  %v441_v8 = vpop.f32.mrb[1].mxu0 }
  0xed   :  { %v109_v9 = vpop.f32.mrb[2].mxu0 }
  0xee   :  { %v112_v10 = vmax.f32 %v107_v7, 0.0  ;;  %v442_v11 = vpop.f32.mrb[3].mxu0 }
  0xf0   :  { %v113_v13 = vpack.c.bf16 %v112_v10, %v112_v10 }
  0xf2   :  { %448 = vmatmul.mubr.msk.bf16.vlgmr.msra.gmra.mrb[4].mxu0 %vm137_vm2, %v113_v13 }
  0xf3   :  { %452 = vmatpush3.bf16.msra.mxu0 %v484_v12  ;;  %455 = vmatprep.mubr.msk.bf16.mxu0 %vm540_vm0, %v539_v0 }
  0xf4   :  { %453 = vmatprep.subr.bf16.mxu0 %v539_v0 }
  0xf7   :  { %454 = vmatpush3.bf16.msra.mxu0 %v485_v14 }
 0x1c5   :  { %v175_v18 = vpop.f32.mrb[4].mxu0 }
 0x1c6   :  { %v176_v19 = vadd.f32 %v410_v17, %v175_v18  ;;  %v449_v20 = vpop.f32.mrb[5].mxu0 }
 0x1c7   :  { %v178_v21 = vpop.f32.mrb[6].mxu0 }
 0x1c8   :  { %v181_v22 = vmax.f32 %v176_v19, 0.0  ;;  %v450_v23 = vpop.f32.mrb[7].mxu0 }
 0x1ca   :  { %v182_v24 = vpack.c.bf16 %v181_v22, %v181_v22 }
 0x1cc   :  { %456 = vmatmul.mubr.msk.bf16.vlgmr.msra.gmra.mrb[8].mxu0 %vm137_vm2, %v182_v24 }
 0x29f   :  { %v243_v28 = vpop.f32.mrb[8].mxu0 }
 0x2a0   :  { %v244_v29 = vadd.f32 %v414_v27, %v243_v28  ;;  %v457_v30 = vpop.f32.mrb[9].mxu0 }
 0x2a1   :  { %v246_v31 = vpop.f32.mrb[10].mxu0 }
 0x2a2   :  { %v249_v32 = vmax.f32 %v244_v29, 0.0  ;;  %v458_v33 = vpop.f32.mrb[11].mxu0 }
 0x2a4   :  { %v250_v34 = vpack.c.bf16 %v249_v32, %v249_v32 }
 0x2a6   :  { %468 = vmatmul.mubr.msk.bf16.vlgmr.msra.gmra.mrb[0].mxu1 %vm290_vm3, %v250_v34 }
 0x379   :  { %v328_v39 = vpop.f32.mrb[0].mxu1 }
 0x37a   :  { %v329_v40 = vadd.f32 %v418_v38, %v328_v39  ;;  %v469_v41 = vpop.f32.mrb[1].mxu1 }
 0x37b   :  { %v331_v42 = vpop.f32.mrb[2].mxu1 }
 0x37c   :  { %365 = vperm.xlu1 %479, %v329_v40   ;;  %v470_v43 = vpop.f32.mrb[3].mxu1  ;;  %v343_v44 = vsel %vm339_vm4, %v329_v40, 0.0 }
 0x37d   :  { %345 = vrot.lane.b32.xlu0 %v343_v44, %s542_s6 }
 0x3ef   :  { %v346_v45 = vpop.permute.xlu0 %345 }
 0x3f0   :  { %v349_v46 = vsel %vm348_vm5, %v346_v45, 0.0 }
 0x3f1   :  { %350 = vadd.xlane.f32.xlu0 %v349_v46 }
 0x3fb   :  { %v366_v47 = vpop.permute.xlu1 %365 }
 0x3fc   :  { %v368_v48 = vadd.f32 %v366_v47, %v329_v40 }
 0x3fe   :  { %370 = vrot.lane.b32.xlu1 %v368_v48, %s542_s6 }
 0x470   :  { %v371_v49 = vpop.permute.xlu1 %370 }
 0x471   :  { %374 = vst.msk [vmem:[#allocation6] sm:$0xff] %vm348_vm5, %v371_v49 }
 0x478   :  { %v380_v0 = vld [vmem:[#allocation6] sm:$0xff] }
 0x47e   :  { %v351_v50 = vpop.xlane.xlu0 %350 }
 0x47f   :  { %v352_v51 = vrot.slane %v351_v50, 4 }
 0x481   :  { %v353_v52 = vadd.f32 %v352_v51, %v351_v50 }
 0x483   :  { %v354_v53 = vrot.slane %v353_v52, 2 }
 0x485   :  { %v355_v54 = vadd.f32 %v354_v53, %v353_v52 }
 0x487   :  { %v356_v55 = vrot.slane %v355_v54, 1 }
 0x489   :  { %v357_v56 = vadd.f32 %v356_v55, %v355_v54 }
 0x48b   :  { %471 = vpush %v357_v56 }
 0x4bc   :  { %s472_s8 = spop %471 }
 0x4bd   :  { %v359_v58 = vstv %s472_s8 }
 0x4be   :  { %v360_v59 = vadd.f32 %v359_v58, %v340_v57 }
 0x4c0   :  { %362 = vst.msk [vmem:[#allocation2] sm:$0x1] %vm50_vm6, %v360_v59 }
 0x4c7   :  { %v378_v61 = vld [vmem:[#allocation2] sm:$0x1] }
 0x4c8   :  { %v379_v62 = vmul.f32 0.0625, %v378_v61 }
 0x4ca   :  { %v385_v63 = vrot.slane %v379_v62, %v384_v60 }
 0x4cc   :  { %387 = vperm.xlu1 %479, %v385_v63  }
 0x54b   :  { %v388_v1 = vpop.permute.xlu1 %387 }
 0x54c   :  { %v390_v2 = vsub.f32 %v380_v0, %v388_v1 }
 0x54e   :  { %391 = vst.msk [vmem:[#allocation6] sm:$0xff] %vm348_vm5, %v390_v2 }
 0x54f   :  { %523 = shalt.err (!%p520_p12)
}
 0x550   :  { %s524_s23 = scalar_lea.hbm %s691_s9, 128 }
 0x551   :  { %p525_p13 = scmp.ne.s32.totalorder %s691_s9, %s524_s23  ;;  %p528_p0 = scmp.lt.u32.totalorder %s524_s23, %s691_s9 }
 0x553   :  { %p530_p1 = pnand %p528_p0, %p525_p13 }
 0x555   :  { %533 = shalt.err (!%p530_p1)
}
 0x556   :  { %401 = dma.vmem_to_hbm [thread:$0]  %s399_s20, 128, %s691_s9, [#allocation5]  }
 0x557   :  { %536 = dma.done.wait [#allocation5], 128  }
 0x558   :  { %537 = vsyncadd [#allocation5], 4294967168 }
 0x559   :  { %405 = vsyncpa [#allocation4], 1 }
 0x55a   :  { %406 = vsyncpa [#allocation5], 1 }

</bundles_post_ra>
